<compile_context>
chip_gen: v6e
topology: v6e:2x2x1
jax: 0.10.0
libtpu: 0.0.40
codegen_flags: <defaults>
</compile_context>

<pallas_src>
import jax
import jax.numpy as jnp
from jax.experimental import pallas as pl
from jax.experimental.pallas import tpu as pltpu

ZE = 32                 # args.ze
Z = 16                  # args.z
HIDDEN = 512
OUT_RAW = 6 * Z         # 96
OUT_PAD = 128           # lane-dense output width; wrapper slices back to 96
EPS = 1e-5
NEG_SLOPE = 0.01        # PyTorch LeakyReLU default
FUSED_MAX_B = 2048      # whole-batch-in-VMEM fused path up to this many rows
DEFAULT_TILE_B = 1024   # tiled-path batch tile
VMEM_LIMIT = 48 << 20   # fits v7x's 64 MiB physical VMEM with headroom


def _leaky(h):
    # 2 VPU ops/elem instead of cmp+mul+select.
    return jnp.maximum(h, NEG_SLOPE * h)


# ---------------------------------------------------------------------------
# Path 1: small/moderate batch — everything resident in VMEM, single kernel.
# ---------------------------------------------------------------------------
def _fused_kernel(x_ref, w1_ref, w2_ref, w3_ref, vec_ref, out_ref):
    B = x_ref.shape[0]
    inv_b = 1.0 / B

    g1 = vec_ref[0:1, :]
    be1 = vec_ref[1:2, :]
    g2 = vec_ref[2:3, :]
    be2 = vec_ref[3:4, :]
    b3 = vec_ref[4:5, 0:OUT_PAD]

    # ---- linear1 (bias dropped; cancels in BN) -> bn1 -> leaky_relu --------
    h = jnp.dot(x_ref[...], w1_ref[...], preferred_element_type=jnp.float32)  # (B,512)
    mean = jnp.sum(h, axis=0, keepdims=True) * inv_b                          # VPU/XLU
    d = h - mean
    var = jnp.sum(d * d, axis=0, keepdims=True) * inv_b
    scale = g1 * jax.lax.rsqrt(var + EPS)
    a = _leaky(d * scale + be1)

    # ---- linear2 (bias dropped) -> bn2 -> leaky_relu -----------------------
    h = jnp.dot(a.astype(jnp.bfloat16), w2_ref[...],
                preferred_element_type=jnp.float32)                           # (B,512)
    mean = jnp.sum(h, axis=0, keepdims=True) * inv_b
    d = h - mean
    var = jnp.sum(d * d, axis=0, keepdims=True) * inv_b
    scale = g2 * jax.lax.rsqrt(var + EPS)
    a = _leaky(d * scale + be2)

    # ---- linear3 (output padded to 128 lanes) -------------------------------
    out = jnp.dot(a.astype(jnp.bfloat16), w3_ref[...],
                  preferred_element_type=jnp.float32) + b3                    # (B,128)
    out_ref[...] = out.astype(out_ref.dtype)


def _forward_fused(x2d_bf, kp):
    B = x2d_bf.shape[0]
    vmem = pl.BlockSpec(memory_space=pltpu.MemorySpace.VMEM)
    return pl.pallas_call(
        _fused_kernel,
        out_shape=jax.ShapeDtypeStruct((B, OUT_PAD), jnp.float32),
        in_specs=[vmem, vmem, vmem, vmem, vmem],
        out_specs=vmem,
        compiler_params=pltpu.CompilerParams(vmem_limit_bytes=VMEM_LIMIT),
    )(x2d_bf, kp["w1"], kp["w2"], kp["w3"], kp["vec"])


# ---------------------------------------------------------------------------
# Path 2: large batch — B-tiled 3-pass pipeline, stats-only passes + output
# pass; h1/h2 are recomputed instead of stored (no (B,512) HBM round-trips).
# ---------------------------------------------------------------------------
def _stats1_kernel(x_ref, w1_ref, s1_ref, q1_ref):
    i = pl.program_id(0)
    h = jnp.dot(x_ref[...], w1_ref[...], preferred_element_type=jnp.float32)  # (TB,512)
    s = jnp.sum(h, axis=0, keepdims=True)
    q = jnp.sum(h * h, axis=0, keepdims=True)

    @pl.when(i == 0)
    def _init():
        s1_ref[...] = jnp.zeros_like(s1_ref)
        q1_ref[...] = jnp.zeros_like(q1_ref)

    s1_ref[...] += s
    q1_ref[...] += q


def _bn_scale_shift(s_ref, q_ref, gamma, beta, inv_b):
    mean = s_ref[...] * inv_b
    var = jnp.maximum(q_ref[...] * inv_b - mean * mean, 0.0)  # clamp: cancellation
    scale = gamma * jax.lax.rsqrt(var + EPS)
    shift = beta - mean * scale
    return scale, shift


def _make_stats2_kernel(b_actual, b_padded, tile_b):
    inv_b = 1.0 / b_actual
    needs_mask = b_padded != b_actual

    def kernel(x_ref, w1_ref, w2_ref, s1_ref, q1_ref, vec_ref, s2_ref, q2_ref):
        i = pl.program_id(0)
        h1 = jnp.dot(x_ref[...], w1_ref[...], preferred_element_type=jnp.float32)
        sc1, sh1 = _bn_scale_shift(s1_ref, q1_ref, vec_ref[0:1, :], vec_ref[1:2, :], inv_b)
        a1 = _leaky(h1 * sc1 + sh1)
        h2 = jnp.dot(a1.astype(jnp.bfloat16), w2_ref[...],
                     preferred_element_type=jnp.float32)                      # (TB,512)
        if needs_mask:
            # Padded rows produce non-zero h2 (bn1 shift); keep them out of stats.
            row = i * tile_b + jax.lax.broadcasted_iota(jnp.int32, h2.shape, 0)
            h2 = jnp.where(row < b_actual, h2, 0.0)
        s = jnp.sum(h2, axis=0, keepdims=True)
        q = jnp.sum(h2 * h2, axis=0, keepdims=True)

        @pl.when(i == 0)
        def _init():
            s2_ref[...] = jnp.zeros_like(s2_ref)
            q2_ref[...] = jnp.zeros_like(q2_ref)

        s2_ref[...] += s
        q2_ref[...] += q

    return kernel


def _make_output_kernel(b_actual):
    inv_b = 1.0 / b_actual

    def kernel(x_ref, w1_ref, w2_ref, w3_ref, s1_ref, q1_ref, s2_ref, q2_ref,
               vec_ref, out_ref):
        h1 = jnp.dot(x_ref[...], w1_ref[...], preferred_element_type=jnp.float32)
        sc1, sh1 = _bn_scale_shift(s1_ref, q1_ref, vec_ref[0:1, :], vec_ref[1:2, :], inv_b)
        a1 = _leaky(h1 * sc1 + sh1)
        h2 = jnp.dot(a1.astype(jnp.bfloat16), w2_ref[...],
                     preferred_element_type=jnp.float32)
        sc2, sh2 = _bn_scale_shift(s2_ref, q2_ref, vec_ref[2:3, :], vec_ref[3:4, :], inv_b)
        a2 = _leaky(h2 * sc2 + sh2)
        out = jnp.dot(a2.astype(jnp.bfloat16), w3_ref[...],
                      preferred_element_type=jnp.float32)                     # (TB,128)
        out_ref[...] = (out + vec_ref[4:5, 0:OUT_PAD]).astype(out_ref.dtype)

    return kernel


def _forward_tiled(x2d_bf, kp, b_actual, tile_b):
    B_pad = x2d_bf.shape[0]
    nb = B_pad // tile_b
    f32 = jnp.float32

    x_spec = pl.BlockSpec((tile_b, ZE), lambda i: (i, 0))
    w1_spec = pl.BlockSpec((ZE, HIDDEN), lambda i: (0, 0))       # resident
    w2_spec = pl.BlockSpec((HIDDEN, HIDDEN), lambda i: (0, 0))   # resident
    w3_spec = pl.BlockSpec((HIDDEN, OUT_PAD), lambda i: (0, 0))  # resident
    vec_spec = pl.BlockSpec((8, HIDDEN), lambda i: (0, 0))       # resident
    stat_spec = pl.BlockSpec((1, HIDDEN), lambda i: (0, 0))      # resident accumulator
    stat_shape = jax.ShapeDtypeStruct((1, HIDDEN), f32)

    params_arb = pltpu.CompilerParams(
        dimension_semantics=("arbitrary",), vmem_limit_bytes=VMEM_LIMIT)

    # Pass A: linear1 + bn1 statistics (no h1 writeback).
    s1, q1 = pl.pallas_call(
        _stats1_kernel,
        grid=(nb,),
        in_specs=(x_spec, w1_spec),
        out_specs=(stat_spec, stat_spec),
        out_shape=(stat_shape, stat_shape),
        compiler_params=params_arb,
    )(x2d_bf, kp["w1"])

    # Pass B: recompute h1, bn1 + leaky + linear2 + bn2 statistics.
    s2, q2 = pl.pallas_call(
        _make_stats2_kernel(b_actual, B_pad, tile_b),
        grid=(nb,),
        in_specs=(x_spec, w1_spec, w2_spec, stat_spec, stat_spec, vec_spec),
        out_specs=(stat_spec, stat_spec),
        out_shape=(stat_shape, stat_shape),
        compiler_params=params_arb,
    )(x2d_bf, kp["w1"], kp["w2"], s1, q1, kp["vec"])

    # Pass C: recompute h1/h2, normalize, linear3 (parallel over B tiles).
    out = pl.pallas_call(
        _make_output_kernel(b_actual),
        grid=(nb,),
        in_specs=(x_spec, w1_spec, w2_spec, w3_spec,
                  stat_spec, stat_spec, stat_spec, stat_spec, vec_spec),
        out_specs=pl.BlockSpec((tile_b, OUT_PAD), lambda i: (i, 0)),
        out_shape=jax.ShapeDtypeStruct((B_pad, OUT_PAD), f32),
        compiler_params=pltpu.CompilerParams(
            dimension_semantics=("parallel",), vmem_limit_bytes=VMEM_LIMIT),
    )(x2d_bf, kp["w1"], kp["w2"], kp["w3"], s1, q1, s2, q2, kp["vec"])

    return out


# ---------------------------------------------------------------------------
# Wrapper (PyTorch view(-1, ze) flatten + head split), parameter packing.
# ---------------------------------------------------------------------------
def _split_heads(out_padded, b):
    o = out_padded[:b, :OUT_RAW].reshape(b, 6, Z)
    return tuple(o[:, i] for i in range(6))


def encoder_forward(x, kparams, *, tile_b=None):
    x2d = jnp.reshape(x, (-1, ZE)).astype(jnp.bfloat16)
    B = x2d.shape[0]

    if tile_b is None:
        if B <= FUSED_MAX_B:
            return _split_heads(_forward_fused(x2d, kparams), B)
        tile_b = DEFAULT_TILE_B

    tile_b = max(8, (tile_b // 8) * 8)
    B_pad = ((B + tile_b - 1) // tile_b) * tile_b
    if B_pad != B:
        # Zero rows: h1 for padded rows is exactly 0 (pre-BN bias dropped), so
        # bn1 stats are untouched; bn2 stats are masked inside pass B.
        pad = jnp.zeros((B_pad - B, ZE), x2d.dtype)
        x2d = jnp.concatenate([x2d, pad], axis=0)
    return _split_heads(_forward_tiled(x2d, kparams, B, tile_b), B)


def init_params(key):
    """PyTorch-faithful f32 parameters (nn.Linear default init, weights (in,out))."""
    def linear(k, fan_in, fan_out):
        kw, kb = jax.random.split(k)
        bound = 1.0 / jnp.sqrt(float(fan_in))
        w = jax.random.uniform(kw, (fan_in, fan_out), jnp.float32, -bound, bound)
        b = jax.random.uniform(kb, (fan_out,), jnp.float32, -bound, bound)
        return w, b

    k1, k2, k3, k4, k5 = jax.random.split(key, 5)
    w1, b1 = linear(k1, ZE, HIDDEN)
    w2, b2 = linear(k2, HIDDEN, HIDDEN)
    w3, b3 = linear(k3, HIDDEN, OUT_RAW)
    # Non-trivial BN affine params to exercise the gamma/beta path.
    g1 = jax.random.uniform(k4, (HIDDEN,), jnp.float32, 0.5, 1.5)
    g2 = jax.random.uniform(k5, (HIDDEN,), jnp.float32, 0.5, 1.5)
    return {
        "w1": w1, "b1": b1, "g1": g1, "be1": jnp.zeros((HIDDEN,), jnp.float32) + 0.1,
        "w2": w2, "b2": b2, "g2": g2, "be2": jnp.zeros((HIDDEN,), jnp.float32) - 0.1,
        "w3": w3, "b3": b3,
    }


def pack_params(p):
    """Kernel-side params: bf16 weights, lane-padded w3/b3, packed BN/bias vectors.

    b1/b2 are intentionally dropped: training-mode BatchNorm subtracts the batch
    mean, so a per-feature bias added before it cancels exactly.
    """
    bf16 = jnp.bfloat16
    w3p = jnp.zeros((HIDDEN, OUT_PAD), jnp.float32).at[:, :OUT_RAW].set(p["w3"])
    b3p = jnp.zeros((OUT_PAD,), jnp.float32).at[:OUT_RAW].set(p["b3"])
    vec = jnp.zeros((8, HIDDEN), jnp.float32)
    vec = vec.at[0, :].set(p["g1"])
    vec = vec.at[1, :].set(p["be1"])
    vec = vec.at[2, :].set(p["g2"])
    vec = vec.at[3, :].set(p["be2"])
    vec = vec.at[4, :OUT_PAD].set(b3p)
    return {
        "w1": p["w1"].astype(bf16),
        "w2": p["w2"].astype(bf16),
        "w3": w3p.astype(bf16),
        "vec": vec,
    }


# ---------------------------------------------------------------------------
# Pure-JAX reference (same mixed-precision matmul policy, full biases, two-pass
# training-mode BatchNorm1d — the dropped b1/b2 must cancel against this).
# ---------------------------------------------------------------------------
def encoder_reference(x, p):
    bf16 = jnp.bfloat16
    x2d = jnp.reshape(x, (-1, ZE)).astype(jnp.float32)

    def lin(h, w, b):
        return jnp.dot(h.astype(bf16), w.astype(bf16),
                       preferred_element_type=jnp.float32) + b

    def bn(h, g, b):
        m = h.mean(0, keepdims=True)
        v = ((h - m) ** 2).mean(0, keepdims=True)
        return (h - m) * jax.lax.rsqrt(v + EPS) * g + b

    def leaky(h):
        return jnp.where(h > 0, h, NEG_SLOPE * h)

    h = leaky(bn(lin(x2d, p["w1"], p["b1"]), p["g1"], p["be1"]))
    h = leaky(bn(lin(h, p["w2"], p["b2"]), p["g2"], p["be2"]))
    o = lin(h, p["w3"], p["b3"]).reshape(-1, 6, Z)
    return tuple(o[:, i] for i in range(6))


def _check(outs, refs, b):
    assert len(outs) == 6
    for o, r in zip(outs, refs):
        assert o.shape == (b, Z), o.shape
        assert bool(jnp.all(jnp.isfinite(o)))
        err = float(jnp.max(jnp.abs(o - r)))
        assert jnp.allclose(o, r, atol=1e-2, rtol=1e-2), err


if __name__ == "__main__":
    key = jax.random.PRNGKey(0)
    kx1, kx2, kx3, kp = jax.random.split(key, 4)

    params = init_params(kp)
    kparams = pack_params(params)

    # --- small batch: (2, 4, 32) -> view(-1, ze) gives B = 8 -> fused path ---
    x_small = jax.random.normal(kx1, (2, 4, ZE), jnp.float32)
    outs = jax.block_until_ready(encoder_forward(x_small, kparams))
    _check(outs, encoder_reference(x_small, params), 8)

    # --- B = 16, tile_b = 8 -> tiled 3-pass recompute pipeline (divisible) ---
    x_mid = jax.random.normal(kx2, (4, 4, ZE), jnp.float32)
    outs_t = jax.block_until_ready(encoder_forward(x_mid, kparams, tile_b=8))
    _check(outs_t, encoder_reference(x_mid, params), 16)

    # --- B = 20, tile_b = 8 -> padded batch + masked bn2 stats ---------------
    x_rag = jax.random.normal(kx3, (5, 4, ZE), jnp.float32)
    outs_r = jax.block_until_ready(encoder_forward(x_rag, kparams, tile_b=8))
    _check(outs_r, encoder_reference(x_rag, params), 20)

    print("KERNEL_OK")
</pallas_src>

<mosaic_0001>
module attributes {stable_mosaic.version = 11 : i64} {
  func.func @_fused_kernel(%arg0: memref<8x32xbf16, #tpu.memory_space<vmem>>, %arg1: memref<32x512xbf16, #tpu.memory_space<vmem>>, %arg2: memref<512x512xbf16, #tpu.memory_space<vmem>>, %arg3: memref<512x128xbf16, #tpu.memory_space<vmem>>, %arg4: memref<8x512xf32, #tpu.memory_space<vmem>>, %arg5: memref<8x128xf32, #tpu.memory_space<vmem>>) attributes {dimension_semantics = [], scalar_prefetch = 0 : i64, scratch_operands = 0 : i64, tpu.core_type = #tpu.core_type<tc>} {
    %c0 = arith.constant 0 : index
    %c0_0 = arith.constant 0 : index
    %0 = vector.load %arg4[%c0, %c0_0] : memref<8x512xf32, #tpu.memory_space<vmem>>, vector<1x512xf32>
    %c1 = arith.constant 1 : index
    %c0_1 = arith.constant 0 : index
    %1 = vector.load %arg4[%c1, %c0_1] : memref<8x512xf32, #tpu.memory_space<vmem>>, vector<1x512xf32>
    %c2 = arith.constant 2 : index
    %c0_2 = arith.constant 0 : index
    %2 = vector.load %arg4[%c2, %c0_2] : memref<8x512xf32, #tpu.memory_space<vmem>>, vector<1x512xf32>
    %c3 = arith.constant 3 : index
    %c0_3 = arith.constant 0 : index
    %3 = vector.load %arg4[%c3, %c0_3] : memref<8x512xf32, #tpu.memory_space<vmem>>, vector<1x512xf32>
    %c4 = arith.constant 4 : index
    %c0_4 = arith.constant 0 : index
    %4 = vector.load %arg4[%c4, %c0_4] : memref<8x512xf32, #tpu.memory_space<vmem>>, vector<1x128xf32>
    %c0_5 = arith.constant 0 : index
    %c0_6 = arith.constant 0 : index
    %5 = vector.load %arg0[%c0_5, %c0_6] : memref<8x32xbf16, #tpu.memory_space<vmem>>, vector<8x32xbf16>
    %c0_7 = arith.constant 0 : index
    %c0_8 = arith.constant 0 : index
    %6 = vector.load %arg1[%c0_7, %c0_8] : memref<32x512xbf16, #tpu.memory_space<vmem>>, vector<32x512xbf16>
    %cst = arith.constant dense<0.000000e+00> : vector<8x512xf32>
    %7 = tpu.matmul %5, %6, %cst {dimension_numbers = #tpu.dot_dimension_numbers<[1], [0], [0], [1], [0, 0, 1, 1], [], []>} : vector<8x32xbf16>, vector<32x512xbf16>, vector<8x512xf32> -> vector<8x512xf32>
    %cst_9 = arith.constant dense<0.000000e+00> : vector<512xf32>
    %8 = vector.multi_reduction <add>, %7, %cst_9 [0] : vector<8x512xf32> to vector<512xf32>
    %9 = vector.shape_cast %8 : vector<512xf32> to vector<1x512xf32>
    %cst_10 = arith.constant 1.250000e-01 : f32
    %10 = vector.broadcast %cst_10 : f32 to vector<1x512xf32>
    %11 = arith.mulf %9, %10 : vector<1x512xf32>
    %12 = vector.broadcast %11 : vector<1x512xf32> to vector<8x512xf32>
    %13 = arith.subf %7, %12 : vector<8x512xf32>
    %14 = arith.mulf %13, %13 : vector<8x512xf32>
    %cst_11 = arith.constant dense<0.000000e+00> : vector<512xf32>
    %15 = vector.multi_reduction <add>, %14, %cst_11 [0] : vector<8x512xf32> to vector<512xf32>
    %16 = vector.shape_cast %15 : vector<512xf32> to vector<1x512xf32>
    %cst_12 = arith.constant 1.250000e-01 : f32
    %17 = vector.broadcast %cst_12 : f32 to vector<1x512xf32>
    %18 = arith.mulf %16, %17 : vector<1x512xf32>
    %cst_13 = arith.constant 9.99999974E-6 : f32
    %19 = vector.broadcast %cst_13 : f32 to vector<1x512xf32>
    %20 = arith.addf %18, %19 : vector<1x512xf32>
    %21 = math.rsqrt %20 : vector<1x512xf32>
    %22 = arith.mulf %0, %21 : vector<1x512xf32>
    %23 = vector.broadcast %22 : vector<1x512xf32> to vector<8x512xf32>
    %24 = arith.mulf %13, %23 : vector<8x512xf32>
    %25 = vector.broadcast %1 : vector<1x512xf32> to vector<8x512xf32>
    %26 = arith.addf %24, %25 : vector<8x512xf32>
    %cst_14 = arith.constant 0.00999999977 : f32
    %27 = vector.broadcast %cst_14 : f32 to vector<8x512xf32>
    %28 = arith.mulf %27, %26 : vector<8x512xf32>
    %29 = arith.maximumf %26, %28 : vector<8x512xf32>
    %30 = arith.truncf %29 : vector<8x512xf32> to vector<8x512xbf16>
    %c0_15 = arith.constant 0 : index
    %c0_16 = arith.constant 0 : index
    %31 = vector.load %arg2[%c0_15, %c0_16] : memref<512x512xbf16, #tpu.memory_space<vmem>>, vector<512x512xbf16>
    %cst_17 = arith.constant dense<0.000000e+00> : vector<8x512xf32>
    %32 = tpu.matmul %30, %31, %cst_17 {dimension_numbers = #tpu.dot_dimension_numbers<[1], [0], [0], [1], [0, 0, 1, 1], [], []>} : vector<8x512xbf16>, vector<512x512xbf16>, vector<8x512xf32> -> vector<8x512xf32>
    %cst_18 = arith.constant dense<0.000000e+00> : vector<512xf32>
    %33 = vector.multi_reduction <add>, %32, %cst_18 [0] : vector<8x512xf32> to vector<512xf32>
    %34 = vector.shape_cast %33 : vector<512xf32> to vector<1x512xf32>
    %cst_19 = arith.constant 1.250000e-01 : f32
    %35 = vector.broadcast %cst_19 : f32 to vector<1x512xf32>
    %36 = arith.mulf %34, %35 : vector<1x512xf32>
    %37 = vector.broadcast %36 : vector<1x512xf32> to vector<8x512xf32>
    %38 = arith.subf %32, %37 : vector<8x512xf32>
    %39 = arith.mulf %38, %38 : vector<8x512xf32>
    %cst_20 = arith.constant dense<0.000000e+00> : vector<512xf32>
    %40 = vector.multi_reduction <add>, %39, %cst_20 [0] : vector<8x512xf32> to vector<512xf32>
    %41 = vector.shape_cast %40 : vector<512xf32> to vector<1x512xf32>
    %cst_21 = arith.constant 1.250000e-01 : f32
    %42 = vector.broadcast %cst_21 : f32 to vector<1x512xf32>
    %43 = arith.mulf %41, %42 : vector<1x512xf32>
    %cst_22 = arith.constant 9.99999974E-6 : f32
    %44 = vector.broadcast %cst_22 : f32 to vector<1x512xf32>
    %45 = arith.addf %43, %44 : vector<1x512xf32>
    %46 = math.rsqrt %45 : vector<1x512xf32>
    %47 = arith.mulf %2, %46 : vector<1x512xf32>
    %48 = vector.broadcast %47 : vector<1x512xf32> to vector<8x512xf32>
    %49 = arith.mulf %38, %48 : vector<8x512xf32>
    %50 = vector.broadcast %3 : vector<1x512xf32> to vector<8x512xf32>
    %51 = arith.addf %49, %50 : vector<8x512xf32>
    %cst_23 = arith.constant 0.00999999977 : f32
    %52 = vector.broadcast %cst_23 : f32 to vector<8x512xf32>
    %53 = arith.mulf %52, %51 : vector<8x512xf32>
    %54 = arith.maximumf %51, %53 : vector<8x512xf32>
    %55 = arith.truncf %54 : vector<8x512xf32> to vector<8x512xbf16>
    %c0_24 = arith.constant 0 : index
    %c0_25 = arith.constant 0 : index
    %56 = vector.load %arg3[%c0_24, %c0_25] : memref<512x128xbf16, #tpu.memory_space<vmem>>, vector<512x128xbf16>
    %cst_26 = arith.constant dense<0.000000e+00> : vector<8x128xf32>
    %57 = tpu.matmul %55, %56, %cst_26 {dimension_numbers = #tpu.dot_dimension_numbers<[1], [0], [0], [1], [0, 0, 1, 1], [], []>} : vector<8x512xbf16>, vector<512x128xbf16>, vector<8x128xf32> -> vector<8x128xf32>
    %58 = vector.broadcast %4 : vector<1x128xf32> to vector<8x128xf32>
    %59 = arith.addf %57, %58 : vector<8x128xf32>
    %c0_27 = arith.constant 0 : index
    %c0_28 = arith.constant 0 : index
    %60 = vector.load %arg5[%c0_27, %c0_28] : memref<8x128xf32, #tpu.memory_space<vmem>>, vector<8x128xf32>
    tpu.vector_store %arg5[%c0_27, %c0_28], %59 {strides = array<i32>} : memref<8x128xf32, #tpu.memory_space<vmem>>, vector<8x128xf32>,
    return
  }
}

</mosaic_0001>

<bundles_post_ra>
// kernel: tpu_custom_call.1
= control target key start
LH: loop header
LB: loop body
LE: loop exit
PB: predicated region body
PF: predicated region fallthrough
CT: control target
= control target key end

     0   :  { %10 = vsyncpa [#allocation3], 0  ;;  %s2585_s0 = inlined_call_operand.hbm [shape: bf16[8,32], index: 0, kind: input, shape index: {}]   ;;  %s2586_s1 = inlined_call_operand.hbm [shape: bf16[32,512], index: 1, kind: input, shape index: {}]   ;;  %s2587_s2 = inlined_call_operand.hbm [shape: bf16[512,512], index: 2, kind: input, shape index: {}]   ;;  %s2588_s3 = inlined_call_operand.hbm [shape: bf16[512,128], index: 3, kind: input, shape index: {}]   ;;  %s2589_s4 = inlined_call_operand.hbm [shape: f32[8,512], index: 4, kind: input, shape index: {}]   ;;  %s2590_s5 = inlined_call_operand.hbm [shape: f32[8,128], index: 5, kind: output, shape index: {}]  }
   0x1   :  { %11 = vsyncpa [#allocation6], 0 }
   0x2   :  { %12 = vsyncpa [#allocation9], 0 }
   0x3   :  { %13 = vsyncpa [#allocation4], 0  ;;  %s2449_s18 = smov [#allocation5]  }
   0x4   :  { %s29_s19 = sshll.u32 %s2449_s18, 4  ;;  %s30_s19 = int_to_ptr.vmem [resolvable:$true] %s29_s19 }
   0x5   :  { %s2329_s20 = scalar_lea.vmem %s30_s19, 1024  ;;  %p2334_p1 = scmp.lt.s32.totalorder %s30_s19, %s30_s19 }
   0x6   :  { %p2330_p0 = scmp.ne.s32.totalorder %s30_s19, %s2329_s20  ;;  %p2335_p2 = scmp.lt.s32.totalorder %s2329_s20, %s2329_s20 }
   0x8   :  { %p2336_p3 = por %p2335_p2, %p2334_p1 }
   0xa   :  { %p2337_p4 = pnand %p2336_p3, %p2330_p0 }
   0xc   :  { %2340 = shalt.err (!%p2337_p4)
}
   0xd   :  { %s2450_s21 = smov 256   ;;  %s2451_s22 = smov 16  }
   0xe   :  { %35 = dma.hbm_to_vmem [thread:$0]  %s2586_s1, 1024, %s30_s19, [#allocation6], %s2450_s21, %s2450_s21, %s2451_s22  }
   0xf   :  { %s2452_s25 = smov [#allocation8]  }
  0x10   :  { %s53_s26 = sshll.u32 %s2452_s25, 4  ;;  %s54_s26 = int_to_ptr.vmem [resolvable:$true] %s53_s26 }
  0x11   :  { %s2349_s27 = scalar_lea.vmem %s54_s26, 4096  ;;  %p2354_p6 = scmp.lt.s32.totalorder %s54_s26, %s54_s26 }
  0x12   :  { %p2350_p5 = scmp.ne.s32.totalorder %s54_s26, %s2349_s27  ;;  %p2355_p7 = scmp.lt.s32.totalorder %s2349_s27, %s2349_s27 }
  0x14   :  { %p2356_p8 = por %p2355_p7, %p2354_p6 }
  0x16   :  { %p2357_p9 = pnand %p2356_p8, %p2350_p5 }
  0x18   :  { %2360 = shalt.err (!%p2357_p9)
}
  0x19   :  { %s2453_s28 = smov 64   ;;  %s2454_s29 = smov 4  }
  0x1a   :  { %59 = dma.hbm_to_vmem [thread:$0]  %s2588_s3, 4096, %s54_s26, [#allocation9], %s2453_s28, %s2453_s28, %s2454_s29  }
  0x1b   :  { %s2455_s7 = smov [#allocation2]   ;;  %s2456_s9 = smov [#allocation7]  }
  0x1c   :  { %s20_s8 = sshll.u32 %s2455_s7, 4  ;;  %s41_s1 = sshll.u32 %s2456_s9, 4  ;;  %s21_s8 = int_to_ptr.vmem [resolvable:$true] %s20_s8  ;;  %s42_s1 = int_to_ptr.vmem [resolvable:$true] %s41_s1 }
  0x1d   :  { %s2369_s10 = scalar_lea.vmem %s21_s8, 64  ;;  %p2374_p11 = scmp.lt.s32.totalorder %s21_s8, %s21_s8 }
  0x1e   :  { %p2370_p10 = scmp.ne.s32.totalorder %s21_s8, %s2369_s10  ;;  %p2375_p12 = scmp.lt.s32.totalorder %s2369_s10, %s2369_s10 }
  0x20   :  { %p2376_p13 = por %p2375_p12, %p2374_p11 }
  0x22   :  { %p2377_p0 = pnand %p2376_p13, %p2370_p10 }
  0x24   :  { %2380 = shalt.err (!%p2377_p0)
}
  0x25   :  { %23 = dma.hbm_to_vmem [thread:$0]  %s2585_s0, 64, %s21_s8, [#allocation3]  }
  0x26   :  { %s2389_s13 = scalar_lea.vmem %s42_s1, 16384  ;;  %p2394_p2 = scmp.lt.s32.totalorder %s42_s1, %s42_s1 }
  0x27   :  { %p2390_p1 = scmp.ne.s32.totalorder %s42_s1, %s2389_s13  ;;  %p2395_p3 = scmp.lt.s32.totalorder %s2389_s13, %s2389_s13 }
  0x29   :  { %p2396_p4 = por %p2395_p3, %p2394_p2 }
  0x2b   :  { %p2397_p5 = pnand %p2396_p4, %p2390_p1 }
  0x2d   :  { %2400 = shalt.err (!%p2397_p5)
}
  0x2e   :  { %47 = dma.hbm_to_vmem [thread:$0]  %s2587_s2, 16384, %s42_s1, [#allocation6], %s2450_s21, %s2450_s21, %s2451_s22  }
  0x2f   :  { %s2457_s15 = smov [#allocation10]  }
  0x30   :  { %s66_s16 = sshll.u32 %s2457_s15, 4  ;;  %s67_s16 = int_to_ptr.vmem [resolvable:$true] %s66_s16 }
  0x31   :  { %s2409_s17 = scalar_lea.vmem %s67_s16, 512  ;;  %p2414_p7 = scmp.lt.s32.totalorder %s67_s16, %s67_s16 }
  0x32   :  { %p2410_p6 = scmp.ne.s32.totalorder %s67_s16, %s2409_s17  ;;  %p2415_p8 = scmp.lt.s32.totalorder %s2409_s17, %s2409_s17 }
  0x34   :  { %p2416_p9 = por %p2415_p8, %p2414_p7 }
  0x36   :  { %p2417_p10 = pnand %p2416_p9, %p2410_p6 }
  0x38   :  { %2420 = shalt.err (!%p2417_p10)
}
  0x39   :  { %69 = dma.hbm_to_vmem [thread:$0]  %s2589_s4, 512, %s67_s16, [#allocation9]  }
  0x3a   :  { %2441 = dma.done.wait [#allocation3], 64  }
  0x3b   :  { %2442 = vsyncadd [#allocation3], 4294967232 }
  0x3c   :  { %2443 = dma.done.wait [#allocation6], 17408  }
  0x3d   :  { %2444 = vsyncadd [#allocation6], 4294949888 }
  0x3e   :  { %2445 = dma.done.wait [#allocation9], 4608  }
  0x3f   :  { %2446 = vsyncadd [#allocation9], 4294962688  ;;  %v2458_v0 = vmov 0   ;;  %v2069_v1 = vld [vmem:[#allocation5 + $0x24] ss:$16 sps:$4 sm:$0xff]   ;;  %vm143_vm0 = vcmask 261120  }
  0x40   :  { %179 = vmatprep.mubr.bf16.mxu0 %v2458_v0  ;;  %220 = vmatprep.mubr.bf16.mxu1 %v2458_v0  ;;  %v2071_v2 = vld [vmem:[#allocation5 + $0x2c] ss:$16 sps:$4 sm:$0xff]   ;;  %v2073_v3 = vld [vmem:[#allocation5 + $0x20] ss:$16 sps:$4 sm:$0xff]   ;;  %v2074_v4 = vld [vmem:[#allocation5 + $0x28] ss:$16 sps:$4 sm:$0xff]  }
  0x41   :  { %159 = vmatprep.subr.bf16.mxu0 %v2069_v1  ;;  %200 = vmatprep.subr.bf16.mxu1 %v2071_v2  ;;  %v2075_v5 = vld [vmem:[#allocation5 + $0x4] ss:$16 sps:$4 sm:$0xff]   ;;  %v2077_v6 = vld [vmem:[#allocation5 + $0xc] ss:$16 sps:$4 sm:$0xff]   ;;  %v2079_v7 = vld [vmem:[#allocation5] ss:$16 sps:$4 sm:$0xff]  }
  0x42   :  { %160 = vmatpush1.bf16.msra.mxu0 %v2073_v3  ;;  %201 = vmatpush1.bf16.msra.mxu1 %v2074_v4  ;;  %v2080_v8 = vld [vmem:[#allocation5 + $0x8] ss:$16 sps:$4 sm:$0xff]   ;;  %v94_v9 = vld [vmem:[#allocation2] sm:$0xf]  ;;  %v2083_v10 = vld [vmem:[#allocation7 + $0xe4] ss:$16 sps:$4 sm:$0xff]  }
  0x43   :  { %161 = vmatprep.subr.bf16.mxu0 %v2075_v5  ;;  %202 = vmatprep.subr.bf16.mxu1 %v2077_v6  ;;  %v2086_v11 = vld [vmem:[#allocation7 + $0x2e4] ss:$16 sps:$4 sm:$0xff]   ;;  %v2081_v12 = vld [vmem:[#allocation7 + $0xe0] ss:$16 sps:$4 sm:$0xff]   ;;  %s2460_s2 = smov [#allocation11]  }
  0x44   :  { %v2084_v13 = vld [vmem:[#allocation7 + $0x2e0] ss:$16 sps:$4 sm:$0xff]   ;;  %v2089_v14 = vld [vmem:[#allocation7 + $0xc4] ss:$16 sps:$4 sm:$0xff]   ;;  %s1832_s4 = sshll.u32 %s2460_s2, 4  ;;  %s1833_s4 = int_to_ptr.vmem [resolvable:$true] %s1832_s4 }
  0x45   :  { %v2092_v15 = vld [vmem:[#allocation7 + $0x2c4] ss:$16 sps:$4 sm:$0xff]   ;;  %v2087_v16 = vld [vmem:[#allocation7 + $0xc0] ss:$16 sps:$4 sm:$0xff]   ;;  %s2421_s19 = scalar_lea.vmem %s1833_s4, 128  ;;  %p2426_p12 = scmp.lt.s32.totalorder %s1833_s4, %s1833_s4 }
  0x46   :  { %162 = vmatpush1.bf16.msra.mxu0 %v2079_v7  ;;  %203 = vmatpush1.bf16.msra.mxu1 %v2080_v8  ;;  %v2090_v17 = vld [vmem:[#allocation7 + $0x2c0] ss:$16 sps:$4 sm:$0xff]   ;;  %v2095_v18 = vld [vmem:[#allocation7 + $0xa4] ss:$16 sps:$4 sm:$0xff]   ;;  %p2422_p11 = scmp.ne.s32.totalorder %s1833_s4, %s2421_s19  ;;  %p2427_p13 = scmp.lt.s32.totalorder %s2421_s19, %s2421_s19 }
  0x47   :  { %1161 = vmatprep.subr.bf16.mxu0 %v2083_v10  ;;  %1202 = vmatprep.subr.bf16.mxu1 %v2086_v11  ;;  %v2098_v19 = vld [vmem:[#allocation7 + $0x2a4] ss:$16 sps:$4 sm:$0xff]   ;;  %v2093_v20 = vld [vmem:[#allocation7 + $0xa0] ss:$16 sps:$4 sm:$0xff]   ;;  %v2179_v10 = vld [vmem:[#allocation7 + $0xec] ss:$16 sps:$4 sm:$0xff]  }
  0x48   :  { %v2096_v21 = vld [vmem:[#allocation7 + $0x2a0] ss:$16 sps:$4 sm:$0xff]   ;;  %v2101_v22 = vld [vmem:[#allocation7 + $0x84] ss:$16 sps:$4 sm:$0xff]   ;;  %v2182_v11 = vld [vmem:[#allocation7 + $0x2ec] ss:$16 sps:$4 sm:$0xff]   ;;  %p2428_p0 = por %p2427_p13, %p2426_p12 }
  0x49   :  { %1851 = vmatmul.mubr.msk.bf16.vlgmr.msra.gmra.mxu0 %vm143_vm0, %v94_v9  ;;  %1852 = vmatmul.mubr.msk.bf16.vlgmr.msra.gmra.mxu1 %vm143_vm0, %v94_v9  ;;  %v2104_v23 = vld [vmem:[#allocation7 + $0x284] ss:$16 sps:$4 sm:$0xff]   ;;  %v2099_v24 = vld [vmem:[#allocation7 + $0x80] ss:$16 sps:$4 sm:$0xff]  }
  0x4a   :  { %1162 = vmatpush1.bf16.msra.mxu0 %v2081_v12  ;;  %1203 = vmatpush1.bf16.msra.mxu1 %v2084_v13  ;;  %v2102_v25 = vld [vmem:[#allocation7 + $0x280] ss:$16 sps:$4 sm:$0xff]   ;;  %v2107_v26 = vld [vmem:[#allocation7 + $0x64] ss:$16 sps:$4 sm:$0xff]   ;;  %p2429_p1 = pnand %p2428_p0, %p2422_p11 }
  0x4b   :  { %1163 = vmatprep.subr.bf16.mxu0 %v2089_v14  ;;  %1204 = vmatprep.subr.bf16.mxu1 %v2092_v15  ;;  %v2110_v27 = vld [vmem:[#allocation7 + $0x264] ss:$16 sps:$4 sm:$0xff]   ;;  %v2105_v28 = vld [vmem:[#allocation7 + $0x60] ss:$16 sps:$4 sm:$0xff]  }
  0x4c   :  { %v2108_v29 = vld [vmem:[#allocation7 + $0x260] ss:$16 sps:$4 sm:$0xff]   ;;  %v2113_v30 = vld [vmem:[#allocation7 + $0x44] ss:$16 sps:$4 sm:$0xff]  }
  0x4d   :  { %v2116_v31 = vld [vmem:[#allocation7 + $0x244] ss:$16 sps:$4 sm:$0xff]   ;;  %v2111_v32 = vld [vmem:[#allocation7 + $0x40] ss:$16 sps:$4 sm:$0xff]  }
  0x4e   :  { %1164 = vmatpush1.bf16.msra.mxu0 %v2087_v16  ;;  %1205 = vmatpush1.bf16.msra.mxu1 %v2090_v17  ;;  %v2114_v33 = vld [vmem:[#allocation7 + $0x240] ss:$16 sps:$4 sm:$0xff]   ;;  %v2119_v34 = vld [vmem:[#allocation7 + $0x24] ss:$16 sps:$4 sm:$0xff]  }
  0x4f   :  { %1165 = vmatprep.subr.bf16.mxu0 %v2095_v18  ;;  %1206 = vmatprep.subr.bf16.mxu1 %v2098_v19  ;;  %v2122_v35 = vld [vmem:[#allocation7 + $0x224] ss:$16 sps:$4 sm:$0xff]   ;;  %v2117_v36 = vld [vmem:[#allocation7 + $0x20] ss:$16 sps:$4 sm:$0xff]  }
  0x50   :  { %v2120_v37 = vld [vmem:[#allocation7 + $0x220] ss:$16 sps:$4 sm:$0xff]   ;;  %v2125_v38 = vld [vmem:[#allocation7 + $0x4] ss:$16 sps:$4 sm:$0xff]  }
  0x51   :  { %v2128_v39 = vld [vmem:[#allocation7 + $0x204] ss:$16 sps:$4 sm:$0xff]   ;;  %v2123_v40 = vld [vmem:[#allocation7] ss:$16 sps:$4 sm:$0xff]  }
  0x52   :  { %1166 = vmatpush1.bf16.msra.mxu0 %v2093_v20  ;;  %1207 = vmatpush1.bf16.msra.mxu1 %v2096_v21  ;;  %v2126_v41 = vld [vmem:[#allocation7 + $0x200] ss:$16 sps:$4 sm:$0xff]   ;;  %v2131_v42 = vld [vmem:[#allocation7 + $0x1e4] ss:$16 sps:$4 sm:$0xff]  }
  0x53   :  { %1167 = vmatprep.subr.bf16.mxu0 %v2101_v22  ;;  %1208 = vmatprep.subr.bf16.mxu1 %v2104_v23  ;;  %v2134_v43 = vld [vmem:[#allocation7 + $0x3e4] ss:$16 sps:$4 sm:$0xff]   ;;  %v2129_v44 = vld [vmem:[#allocation7 + $0x1e0] ss:$16 sps:$4 sm:$0xff]  }
  0x54   :  { %v2132_v45 = vld [vmem:[#allocation7 + $0x3e0] ss:$16 sps:$4 sm:$0xff]   ;;  %v2137_v46 = vld [vmem:[#allocation7 + $0x1c4] ss:$16 sps:$4 sm:$0xff]  }
  0x55   :  { %v2140_v47 = vld [vmem:[#allocation7 + $0x3c4] ss:$16 sps:$4 sm:$0xff]   ;;  %v2135_v48 = vld [vmem:[#allocation7 + $0x1c0] ss:$16 sps:$4 sm:$0xff]  }
  0x56   :  { %1168 = vmatpush1.bf16.msra.mxu0 %v2099_v24  ;;  %1209 = vmatpush1.bf16.msra.mxu1 %v2102_v25  ;;  %v2138_v49 = vld [vmem:[#allocation7 + $0x3c0] ss:$16 sps:$4 sm:$0xff]   ;;  %v2143_v50 = vld [vmem:[#allocation7 + $0x1a4] ss:$16 sps:$4 sm:$0xff]  }
  0x57   :  { %1169 = vmatprep.subr.bf16.mxu0 %v2107_v26  ;;  %1210 = vmatprep.subr.bf16.mxu1 %v2110_v27  ;;  %v2146_v51 = vld [vmem:[#allocation7 + $0x3a4] ss:$16 sps:$4 sm:$0xff]   ;;  %v2141_v52 = vld [vmem:[#allocation7 + $0x1a0] ss:$16 sps:$4 sm:$0xff]  }
  0x58   :  { %v2144_v53 = vld [vmem:[#allocation7 + $0x3a0] ss:$16 sps:$4 sm:$0xff]   ;;  %v2149_v54 = vld [vmem:[#allocation7 + $0x184] ss:$16 sps:$4 sm:$0xff]  }
  0x59   :  { %v2152_v55 = vld [vmem:[#allocation7 + $0x384] ss:$16 sps:$4 sm:$0xff]   ;;  %v2147_v56 = vld [vmem:[#allocation7 + $0x180] ss:$16 sps:$4 sm:$0xff]  }
  0x5a   :  { %1170 = vmatpush1.bf16.msra.mxu0 %v2105_v28  ;;  %1211 = vmatpush1.bf16.msra.mxu1 %v2108_v29  ;;  %v2150_v57 = vld [vmem:[#allocation7 + $0x380] ss:$16 sps:$4 sm:$0xff]   ;;  %v2155_v58 = vld [vmem:[#allocation7 + $0x164] ss:$16 sps:$4 sm:$0xff]  }
  0x5b   :  { %1171 = vmatprep.subr.bf16.mxu0 %v2113_v30  ;;  %1212 = vmatprep.subr.bf16.mxu1 %v2116_v31  ;;  %v2158_v59 = vld [vmem:[#allocation7 + $0x364] ss:$16 sps:$4 sm:$0xff]   ;;  %v2153_v60 = vld [vmem:[#allocation7 + $0x160] ss:$16 sps:$4 sm:$0xff]  }
  0x5c   :  { %v2156_v61 = vld [vmem:[#allocation7 + $0x360] ss:$16 sps:$4 sm:$0xff]   ;;  %v2161_v62 = vld [vmem:[#allocation7 + $0x144] ss:$16 sps:$4 sm:$0xff]  }
  0x5d   :  { %v2164_v63 = vld [vmem:[#allocation7 + $0x344] ss:$16 sps:$4 sm:$0xff]   ;;  %v2159_v0 = vld [vmem:[#allocation7 + $0x140] ss:$16 sps:$4 sm:$0xff]  }
  0x5e   :  { %1172 = vmatpush1.bf16.msra.mxu0 %v2111_v32  ;;  %1213 = vmatpush1.bf16.msra.mxu1 %v2114_v33  ;;  %v2162_v1 = vld [vmem:[#allocation7 + $0x340] ss:$16 sps:$4 sm:$0xff]   ;;  %v2167_v3 = vld [vmem:[#allocation7 + $0x124] ss:$16 sps:$4 sm:$0xff]  }
  0x5f   :  { %1173 = vmatprep.subr.bf16.mxu0 %v2119_v34  ;;  %1214 = vmatprep.subr.bf16.mxu1 %v2122_v35  ;;  %v2165_v2 = vld [vmem:[#allocation7 + $0x120] ss:$16 sps:$4 sm:$0xff]   ;;  %v2170_v5 = vld [vmem:[#allocation7 + $0x324] ss:$16 sps:$4 sm:$0xff]  }
  0x60   :  { %v2168_v4 = vld [vmem:[#allocation7 + $0x320] ss:$16 sps:$4 sm:$0xff]   ;;  %v2173_v6 = vld [vmem:[#allocation7 + $0x104] ss:$16 sps:$4 sm:$0xff]  }
  0x61   :  { %v2176_v7 = vld [vmem:[#allocation7 + $0x304] ss:$16 sps:$4 sm:$0xff]   ;;  %v2171_v8 = vld [vmem:[#allocation7 + $0x100] ss:$16 sps:$4 sm:$0xff]  }
  0x62   :  { %1174 = vmatpush1.bf16.msra.mxu0 %v2117_v36  ;;  %1215 = vmatpush1.bf16.msra.mxu1 %v2120_v37  ;;  %v2174_v9 = vld [vmem:[#allocation7 + $0x300] ss:$16 sps:$4 sm:$0xff]  }
  0x63   :  { %1175 = vmatprep.subr.bf16.mxu0 %v2125_v38  ;;  %1216 = vmatprep.subr.bf16.mxu1 %v2128_v39 }
  0x66   :  { %1176 = vmatpush1.bf16.msra.mxu0 %v2123_v40  ;;  %1217 = vmatpush1.bf16.msra.mxu1 %v2126_v41 }
  0x67   :  { %1177 = vmatprep.subr.bf16.mxu0 %v2131_v42  ;;  %1218 = vmatprep.subr.bf16.mxu1 %v2134_v43 }
  0x6a   :  { %1178 = vmatpush2.bf16.msra.mxu0 %v2129_v44  ;;  %1219 = vmatpush2.bf16.msra.mxu1 %v2132_v45 }
  0x6b   :  { %1179 = vmatprep.subr.bf16.mxu0 %v2137_v46  ;;  %1220 = vmatprep.subr.bf16.mxu1 %v2140_v47 }
  0x6e   :  { %1180 = vmatpush2.bf16.msra.mxu0 %v2135_v48  ;;  %1221 = vmatpush2.bf16.msra.mxu1 %v2138_v49 }
  0x6f   :  { %1181 = vmatprep.subr.bf16.mxu0 %v2143_v50  ;;  %1222 = vmatprep.subr.bf16.mxu1 %v2146_v51 }
  0x72   :  { %1182 = vmatpush2.bf16.msra.mxu0 %v2141_v52  ;;  %1223 = vmatpush2.bf16.msra.mxu1 %v2144_v53 }
  0x73   :  { %1183 = vmatprep.subr.bf16.mxu0 %v2149_v54  ;;  %1224 = vmatprep.subr.bf16.mxu1 %v2152_v55 }
  0x76   :  { %1184 = vmatpush2.bf16.msra.mxu0 %v2147_v56  ;;  %1225 = vmatpush2.bf16.msra.mxu1 %v2150_v57 }
  0x77   :  { %1185 = vmatprep.subr.bf16.mxu0 %v2155_v58  ;;  %1226 = vmatprep.subr.bf16.mxu1 %v2158_v59 }
  0x7a   :  { %1186 = vmatpush2.bf16.msra.mxu0 %v2153_v60  ;;  %1227 = vmatpush2.bf16.msra.mxu1 %v2156_v61 }
  0x7b   :  { %1187 = vmatprep.subr.bf16.mxu0 %v2161_v62  ;;  %1228 = vmatprep.subr.bf16.mxu1 %v2164_v63 }
  0x7e   :  { %1188 = vmatpush2.bf16.msra.mxu0 %v2159_v0  ;;  %1229 = vmatpush2.bf16.msra.mxu1 %v2162_v1 }
  0x7f   :  { %1189 = vmatprep.subr.bf16.mxu0 %v2167_v3  ;;  %1230 = vmatprep.subr.bf16.mxu1 %v2170_v5 }
  0x82   :  { %1190 = vmatpush2.bf16.msra.mxu0 %v2165_v2  ;;  %1231 = vmatpush2.bf16.msra.mxu1 %v2168_v4 }
  0x83   :  { %1191 = vmatprep.subr.bf16.mxu0 %v2173_v6  ;;  %1232 = vmatprep.subr.bf16.mxu1 %v2176_v7 }
  0x86   :  { %1192 = vmatpush2.bf16.msra.mxu0 %v2171_v8  ;;  %1233 = vmatpush2.bf16.msra.mxu1 %v2174_v9 }
  0x87   :  { %1243 = vmatprep.subr.bf16.mxu0 %v2179_v10  ;;  %1284 = vmatprep.subr.bf16.mxu1 %v2182_v11 }
 0x109   :  { %v181_v12 = vpop.f32.mrf.mxu0  ;;  %v222_v13 = vpop.f32.mrf.mxu1 }
 0x10a   :  { %v229_v14 = vrot.slane %v181_v12, 4  ;;  %v241_v15 = vrot.slane %v222_v13, 4 }
 0x10b   :  { %v183_v16 = vpop.f32.mrf.mxu0  ;;  %v224_v17 = vpop.f32.mrf.mxu1 }
 0x10c   :  { %v230_v18 = vadd.f32 %v229_v14, %v181_v12  ;;  %v242_v19 = vadd.f32 %v241_v15, %v222_v13  ;;  %v235_v20 = vrot.slane %v183_v16, 4  ;;  %v247_v21 = vrot.slane %v224_v17, 4 }
 0x10d   :  { %v185_v22 = vpop.f32.mrf.mxu0  ;;  %v226_v23 = vpop.f32.mrf.mxu1 }
 0x10e   :  { %v231_v24 = vrot.slane %v230_v18, 2  ;;  %v243_v25 = vrot.slane %v242_v19, 2  ;;  %v236_v26 = vadd.f32 %v235_v20, %v183_v16  ;;  %v248_v27 = vadd.f32 %v247_v21, %v224_v17 }
 0x10f   :  { %v186_v28 = vpop.f32.mrf.mxu0  ;;  %v227_v29 = vpop.f32.mrf.mxu1 }
 0x110   :  { %v232_v30 = vadd.f32 %v231_v24, %v230_v18  ;;  %v244_v31 = vadd.f32 %v243_v25, %v242_v19  ;;  %v237_v32 = vrot.slane %v236_v26, 2  ;;  %v249_v33 = vrot.slane %v248_v27, 2 }
 0x111   :  { %v2459_v24 = vmov 1966171168  }
 0x112   :  { %v233_v34 = vrot.slane %v232_v30, 1  ;;  %v245_v35 = vrot.slane %v244_v31, 1  ;;  %v238_v36 = vadd.f32 %v237_v32, %v236_v26  ;;  %v250_v37 = vadd.f32 %v249_v33, %v248_v27 }
 0x113   :  { %v308_v25 = vunpack.c.l.s4 %v2459_v24  ;;  %v310_v26 = vlaneseq  ;;  %v2198_v24 = vld [vmem:[#allocation7 + $0x288] ss:$16 sps:$4 sm:$0xff]  }
 0x114   :  { %v234_v38 = vadd.f32 %v233_v34, %v232_v30  ;;  %v246_v39 = vadd.f32 %v245_v35, %v244_v31  ;;  %v239_v40 = vrot.slane %v238_v36, 1  ;;  %v251_v41 = vrot.slane %v250_v37, 1 }
 0x115   :  { %v309_v27 = vunpack.c.0.s8 %v308_v25  ;;  %v311_v28 = vshrl.u32 %v310_v26, 7  ;;  %v2203_v25 = vld [vmem:[#allocation7 + $0x6c] ss:$16 sps:$4 sm:$0xff]  }
 0x116   :  { %v253_v42 = vmul.f32 0.125, %v234_v38  ;;  %v255_v43 = vmul.f32 0.125, %v246_v39  ;;  %v240_v44 = vadd.f32 %v239_v40, %v238_v36  ;;  %v252_v45 = vadd.f32 %v251_v41, %v250_v37  ;;  %v86_v39 = vld [vmem:[#allocation10] ss:$8 sm:$0xf] }
 0x117   :  { %v2528_v31 = vsub.s32 %v309_v27, %v311_v28  ;;  %v2532_v40 = vsub.s32 3, %v311_v28  ;;  %v2206_v26 = vld [vmem:[#allocation7 + $0x26c] ss:$16 sps:$4 sm:$0xff]   ;;  %v2201_v27 = vld [vmem:[#allocation7 + $0x68] ss:$16 sps:$4 sm:$0xff]  }
 0x118   :  { %v2512_v46 = vsub.f32 %v181_v12, %v253_v42  ;;  %v2514_v47 = vsub.f32 %v222_v13, %v255_v43  ;;  %v254_v48 = vmul.f32 0.125, %v240_v44  ;;  %v256_v49 = vmul.f32 0.125, %v252_v45  ;;  %v88_v42 = vld [vmem:[#allocation10 + $0x1] ss:$8 sm:$0xf] }
 0x119   :  { %v2535_v43 = vsub.s32 1, %v311_v28  ;;  %v2537_v44 = vsub.s32 0, %v311_v28  ;;  %v2539_v45 = vsub.s32 2, %v311_v28  ;;  %v2204_v28 = vld [vmem:[#allocation7 + $0x268] ss:$16 sps:$4 sm:$0xff]  }
 0x11a   :  { %v261_v50 = vmul.f32 %v2512_v46, %v2512_v46  ;;  %v263_v51 = vmul.f32 %v2514_v47, %v2514_v47  ;;  %v2520_v52 = vsub.f32 %v183_v16, %v254_v48  ;;  %v2522_v53 = vsub.f32 %v224_v17, %v256_v49 }
 0x11b   :  { %v364_v49 = vrot.slane %v88_v42, %v2535_v43 }
 0x11c   :  { %v265_v54 = vrot.slane %v261_v50, 4  ;;  %v277_v55 = vrot.slane %v263_v51, 4  ;;  %v262_v56 = vmul.f32 %v2520_v52, %v2520_v52  ;;  %v264_v57 = vmul.f32 %v2522_v53, %v2522_v53 }
 0x11e   :  { %v266_v58 = vadd.f32 %v265_v54, %v261_v50  ;;  %v278_v59 = vadd.f32 %v277_v55, %v263_v51  ;;  %v271_v60 = vrot.slane %v262_v56, 4  ;;  %v283_v61 = vrot.slane %v264_v57, 4 }
 0x11f   :  { %v372_v50 = vrot.slane %v88_v42, %v2532_v40  ;;  %v360_v51 = vrot.slane %v88_v42, %v2537_v44  ;;  %v368_v54 = vrot.slane %v88_v42, %v2539_v45  ;;  %v2222_v42 = vld [vmem:[#allocation7 + $0x208] ss:$16 sps:$4 sm:$0xff]  }
 0x120   :  { %v267_v62 = vrot.slane %v266_v58, 2  ;;  %v279_v63 = vrot.slane %v278_v59, 2  ;;  %v272_v0 = vadd.f32 %v271_v60, %v262_v56  ;;  %v284_v1 = vadd.f32 %v283_v61, %v264_v57 }
 0x122   :  { %v268_v2 = vadd.f32 %v267_v62, %v266_v58  ;;  %v280_v3 = vadd.f32 %v279_v63, %v278_v59  ;;  %v273_v4 = vrot.slane %v272_v0, 2  ;;  %v285_v5 = vrot.slane %v284_v1, 2 }
 0x124   :  { %v269_v6 = vrot.slane %v268_v2, 1  ;;  %v281_v7 = vrot.slane %v280_v3, 1  ;;  %v274_v8 = vadd.f32 %v273_v4, %v272_v0  ;;  %v286_v9 = vadd.f32 %v285_v5, %v284_v1 }
 0x126   :  { %v270_v10 = vadd.f32 %v269_v6, %v268_v2  ;;  %v282_v11 = vadd.f32 %v281_v7, %v280_v3  ;;  %v275_v12 = vrot.slane %v274_v8, 1  ;;  %v287_v13 = vrot.slane %v286_v9, 1 }
 0x128   :  { %v289_v14 = vmul.f32 0.125, %v270_v10  ;;  %v291_v15 = vmul.f32 0.125, %v282_v11  ;;  %v276_v16 = vadd.f32 %v275_v12, %v274_v8  ;;  %v288_v17 = vadd.f32 %v287_v13, %v286_v9  ;;  %v2177_v12 = vld [vmem:[#allocation7 + $0xe8] ss:$16 sps:$4 sm:$0xff]  }
 0x12a   :  { %v293_v18 = vadd.f32 1e-05, %v289_v14  ;;  %v295_v19 = vadd.f32 1e-05, %v291_v15  ;;  %v290_v20 = vmul.f32 0.125, %v276_v16  ;;  %v292_v21 = vmul.f32 0.125, %v288_v17 }
 0x12b   :  { %v2188_v14 = vld [vmem:[#allocation7 + $0x2cc] ss:$16 sps:$4 sm:$0xff]   ;;  %v2183_v15 = vld [vmem:[#allocation7 + $0xc8] ss:$16 sps:$4 sm:$0xff]  }
 0x12c   :  { %2305 = vrsqrt.f32 %v293_v18  ;;  %v294_v22 = vadd.f32 1e-05, %v290_v20  ;;  %v296_v23 = vadd.f32 1e-05, %v292_v21  ;;  %v2186_v16 = vld [vmem:[#allocation7 + $0x2c8] ss:$16 sps:$4 sm:$0xff]  }
 0x12d   :  { %2307 = vrsqrt.f32 %v295_v19  ;;  %v2191_v17 = vld [vmem:[#allocation7 + $0xac] ss:$16 sps:$4 sm:$0xff]   ;;  %v2189_v19 = vld [vmem:[#allocation7 + $0xa8] ss:$16 sps:$4 sm:$0xff]  }
 0x12e   :  { %2309 = vrsqrt.f32 %v294_v22  ;;  %v2194_v18 = vld [vmem:[#allocation7 + $0x2ac] ss:$16 sps:$4 sm:$0xff]   ;;  %v2192_v20 = vld [vmem:[#allocation7 + $0x2a8] ss:$16 sps:$4 sm:$0xff]  }
 0x12f   :  { %2311 = vrsqrt.f32 %v296_v23  ;;  %v2197_v21 = vld [vmem:[#allocation7 + $0x8c] ss:$16 sps:$4 sm:$0xff]   ;;  %v2195_v23 = vld [vmem:[#allocation7 + $0x88] ss:$16 sps:$4 sm:$0xff]  }
 0x130   :  { %v2200_v22 = vld [vmem:[#allocation7 + $0x28c] ss:$16 sps:$4 sm:$0xff]  }
 0x139   :  { %v2306_v29 = vpop.eup %2305 }
 0x13a   :  { %v2308_v30 = vpop.eup %2307 }
 0x13b   :  { %v2310_v32 = vpop.eup %2309 }
 0x13c   :  { %v2312_v33 = vpop.eup %2311  ;;  %v305_v34 = vcombine.low %v2306_v29, %v2310_v32  ;;  %v2209_v29 = vld [vmem:[#allocation7 + $0x4c] ss:$16 sps:$4 sm:$0xff]   ;;  %v2207_v32 = vld [vmem:[#allocation7 + $0x48] ss:$16 sps:$4 sm:$0xff]  }
 0x13d   :  { %v306_v35 = vcombine.low %v2308_v30, %v2312_v33  ;;  %v2212_v30 = vld [vmem:[#allocation7 + $0x24c] ss:$16 sps:$4 sm:$0xff]   ;;  %v2210_v33 = vld [vmem:[#allocation7 + $0x248] ss:$16 sps:$4 sm:$0xff]  }
 0x13e   :  { %v313_v36 = vrot.slane %v305_v34, %v2528_v31  ;;  %v2215_v34 = vld [vmem:[#allocation7 + $0x2c] ss:$16 sps:$4 sm:$0xff]  }
 0x13f   :  { %v320_v37 = vrot.slane %v306_v35, %v2528_v31  ;;  %v2218_v35 = vld [vmem:[#allocation7 + $0x22c] ss:$16 sps:$4 sm:$0xff]  }
 0x141   :  { %v321_v38 = vcombine.low %v313_v36, %v320_v37  ;;  %v2213_v36 = vld [vmem:[#allocation7 + $0x28] ss:$16 sps:$4 sm:$0xff]  }
 0x142   :  { %v2216_v37 = vld [vmem:[#allocation7 + $0x228] ss:$16 sps:$4 sm:$0xff]  }
 0x143   :  { %v328_v41 = vrot.slane %v321_v38, %v2528_v31  ;;  %v2221_v38 = vld [vmem:[#allocation7 + $0xc] ss:$16 sps:$4 sm:$0xff]  }
 0x145   :  { %v330_v48 = vmul.f32 %v328_v41, %v86_v39  ;;  %v2224_v39 = vld [vmem:[#allocation7 + $0x20c] ss:$16 sps:$4 sm:$0xff]   ;;  %v2219_v41 = vld [vmem:[#allocation7 + $0x8] ss:$16 sps:$4 sm:$0xff]  }
 0x147   :  { %v347_v55 = vrot.slane %v330_v48, %v2532_v40  ;;  %v339_v56 = vrot.slane %v330_v48, %v2535_v43  ;;  %v335_v57 = vrot.slane %v330_v48, %v2537_v44  ;;  %v343_v58 = vrot.slane %v330_v48, %v2539_v45  ;;  %v2227_v48 = vld [vmem:[#allocation7 + $0x1ec] ss:$16 sps:$4 sm:$0xff]  }
 0x149   :  { %v355_v59 = vmul.f32 %v347_v55, %v2522_v53  ;;  %v353_v60 = vmul.f32 %v339_v56, %v2520_v52  ;;  %v352_v61 = vmul.f32 %v335_v57, %v2512_v46  ;;  %v354_v62 = vmul.f32 %v343_v58, %v2514_v47  ;;  %v2180_v52 = vld [vmem:[#allocation7 + $0x2e8] ss:$16 sps:$4 sm:$0xff]   ;;  %v2185_v47 = vld [vmem:[#allocation7 + $0xcc] ss:$16 sps:$4 sm:$0xff]  }
 0x14a   :  { %v2236_v55 = vld [vmem:[#allocation7 + $0x3cc] ss:$16 sps:$4 sm:$0xff]   ;;  %v2231_v56 = vld [vmem:[#allocation7 + $0x1c8] ss:$16 sps:$4 sm:$0xff]  }
 0x14b   :  { %v378_v63 = vadd.f32 %v364_v49, %v353_v60  ;;  %v380_v0 = vadd.f32 %v372_v50, %v355_v59  ;;  %v377_v1 = vadd.f32 %v360_v51, %v352_v61  ;;  %v379_v2 = vadd.f32 %v368_v54, %v354_v62  ;;  %v2230_v49 = vld [vmem:[#allocation7 + $0x3ec] ss:$16 sps:$4 sm:$0xff]   ;;  %v2225_v50 = vld [vmem:[#allocation7 + $0x1e8] ss:$16 sps:$4 sm:$0xff]  }
 0x14c   :  { %v2228_v51 = vld [vmem:[#allocation7 + $0x3e8] ss:$16 sps:$4 sm:$0xff]   ;;  %v2233_v54 = vld [vmem:[#allocation7 + $0x1cc] ss:$16 sps:$4 sm:$0xff]  }
 0x14d   :  { %v382_v3 = vmul.f32 0.01, %v378_v63  ;;  %v384_v4 = vmul.f32 0.01, %v380_v0  ;;  %v381_v5 = vmul.f32 0.01, %v377_v1 }
 0x14e   :  { %v383_v6 = vmul.f32 0.01, %v379_v2  ;;  %v2234_v57 = vld [vmem:[#allocation7 + $0x3c8] ss:$16 sps:$4 sm:$0xff]   ;;  %v2239_v58 = vld [vmem:[#allocation7 + $0x1ac] ss:$16 sps:$4 sm:$0xff]  }
 0x14f   :  { %v386_v7 = vmax.f32 %v378_v63, %v382_v3  ;;  %v388_v8 = vmax.f32 %v380_v0, %v384_v4  ;;  %v385_v9 = vmax.f32 %v377_v1, %v381_v5  ;;  %v2242_v59 = vld [vmem:[#allocation7 + $0x3ac] ss:$16 sps:$4 sm:$0xff]   ;;  %v2237_v60 = vld [vmem:[#allocation7 + $0x1a8] ss:$16 sps:$4 sm:$0xff]  }
 0x150   :  { %v387_v10 = vmax.f32 %v379_v2, %v383_v6  ;;  %v2240_v61 = vld [vmem:[#allocation7 + $0x3a8] ss:$16 sps:$4 sm:$0xff]   ;;  %v2245_v62 = vld [vmem:[#allocation7 + $0x18c] ss:$16 sps:$4 sm:$0xff]  }
 0x151   :  { %v390_v11 = vpack.c.bf16 %v386_v7, %v386_v7  ;;  %v392_v53 = vpack.c.bf16 %v388_v8, %v388_v8  ;;  %v2553_v13 = vpack.c.bf16 %v385_v9, %v385_v9  ;;  %v2248_v63 = vld [vmem:[#allocation7 + $0x38c] ss:$16 sps:$4 sm:$0xff]   ;;  %v2243_v0 = vld [vmem:[#allocation7 + $0x188] ss:$16 sps:$4 sm:$0xff]  }
 0x152   :  { %v2555_v46 = vpack.c.bf16 %v387_v10, %v387_v10  ;;  %v2246_v1 = vld [vmem:[#allocation7 + $0x388] ss:$16 sps:$4 sm:$0xff]   ;;  %v2251_v2 = vld [vmem:[#allocation7 + $0x16c] ss:$16 sps:$4 sm:$0xff]  }
 0x153   :  { %1193 = vmatprep.mubr.bf16.mxu0 %v390_v11  ;;  %1234 = vmatprep.mubr.bf16.mxu1 %v392_v53  ;;  %v2254_v3 = vld [vmem:[#allocation7 + $0x36c] ss:$16 sps:$4 sm:$0xff]   ;;  %v2249_v4 = vld [vmem:[#allocation7 + $0x168] ss:$16 sps:$4 sm:$0xff]  }
 0x154   :  { %1194 = vmatmul.mubr.bf16.vlgmr.msra.gmra.mxu0 %v2553_v13  ;;  %1235 = vmatmul.mubr.bf16.vlgmr.msra.gmra.mxu1 %v2555_v46  ;;  %v2252_v5 = vld [vmem:[#allocation7 + $0x368] ss:$16 sps:$4 sm:$0xff]   ;;  %v2257_v6 = vld [vmem:[#allocation7 + $0x14c] ss:$16 sps:$4 sm:$0xff]  }
 0x155   :  { %1244 = vmatpush1.bf16.msra.mxu0 %v2177_v12  ;;  %1285 = vmatpush1.bf16.msra.mxu1 %v2180_v52  ;;  %v2260_v7 = vld [vmem:[#allocation7 + $0x34c] ss:$16 sps:$4 sm:$0xff]   ;;  %v2255_v8 = vld [vmem:[#allocation7 + $0x148] ss:$16 sps:$4 sm:$0xff]  }
 0x156   :  { %1275 = vmatprep.mubr.bf16.mxu0 %v390_v11  ;;  %1316 = vmatprep.mubr.bf16.mxu1 %v392_v53  ;;  %v2258_v9 = vld [vmem:[#allocation7 + $0x348] ss:$16 sps:$4 sm:$0xff]   ;;  %v2263_v10 = vld [vmem:[#allocation7 + $0x12c] ss:$16 sps:$4 sm:$0xff]  }
 0x157   :  { %1245 = vmatprep.subr.bf16.mxu0 %v2185_v47  ;;  %1286 = vmatprep.subr.bf16.mxu1 %v2188_v14  ;;  %v2266_v11 = vld [vmem:[#allocation7 + $0x32c] ss:$16 sps:$4 sm:$0xff]   ;;  %v2261_v53 = vld [vmem:[#allocation7 + $0x128] ss:$16 sps:$4 sm:$0xff]  }
 0x158   :  { %v2264_v12 = vld [vmem:[#allocation7 + $0x328] ss:$16 sps:$4 sm:$0xff]   ;;  %v2269_v52 = vld [vmem:[#allocation7 + $0x10c] ss:$16 sps:$4 sm:$0xff]  }
 0x159   :  { %1246 = vmatpush1.bf16.msra.mxu0 %v2183_v15  ;;  %1287 = vmatpush1.bf16.msra.mxu1 %v2186_v16  ;;  %v2272_v47 = vld [vmem:[#allocation7 + $0x30c] ss:$16 sps:$4 sm:$0xff]   ;;  %v2267_v14 = vld [vmem:[#allocation7 + $0x108] ss:$16 sps:$4 sm:$0xff]  }
 0x15a   :  { %1247 = vmatprep.subr.bf16.mxu0 %v2191_v17  ;;  %1288 = vmatprep.subr.bf16.mxu1 %v2194_v18  ;;  %v2270_v15 = vld [vmem:[#allocation7 + $0x308] ss:$16 sps:$4 sm:$0xff]  }
 0x15b   :  { %v2273_v16 = vld [vmem:[#allocation8 + $0x78] sm:$0xff]  }
 0x15c   :  { %v2274_v17 = vld [vmem:[#allocation8 + $0xf8] sm:$0xff]  }
 0x15d   :  { %1248 = vmatpush1.bf16.msra.mxu0 %v2189_v19  ;;  %1289 = vmatpush1.bf16.msra.mxu1 %v2192_v20  ;;  %v2275_v18 = vld [vmem:[#allocation8 + $0x38] sm:$0xff]   ;;  %v2277_v20 = vld [vmem:[#allocation8 + $0x70] sm:$0xff]  }
 0x15e   :  { %1249 = vmatprep.subr.bf16.mxu0 %v2197_v21  ;;  %1290 = vmatprep.subr.bf16.mxu1 %v2200_v22  ;;  %v2276_v19 = vld [vmem:[#allocation8 + $0xb8] sm:$0xff]   ;;  %v2278_v21 = vld [vmem:[#allocation8 + $0xf0] sm:$0xff]  }
 0x15f   :  { %v2279_v22 = vld [vmem:[#allocation8 + $0x30] sm:$0xff]  }
 0x161   :  { %1250 = vmatpush1.bf16.msra.mxu0 %v2195_v23  ;;  %1291 = vmatpush1.bf16.msra.mxu1 %v2198_v24  ;;  %v2280_v23 = vld [vmem:[#allocation8 + $0xb0] sm:$0xff]   ;;  %v2281_v24 = vld [vmem:[#allocation8 + $0x68] sm:$0xff]  }
 0x162   :  { %1251 = vmatprep.subr.bf16.mxu0 %v2203_v25  ;;  %1292 = vmatprep.subr.bf16.mxu1 %v2206_v26  ;;  %v2283_v25 = vld [vmem:[#allocation8 + $0x28] sm:$0xff]   ;;  %v2285_v26 = vld [vmem:[#allocation8 + $0x60] sm:$0xff]  }
 0x165   :  { %1252 = vmatpush1.bf16.msra.mxu0 %v2201_v27  ;;  %1293 = vmatpush1.bf16.msra.mxu1 %v2204_v28  ;;  %v2286_v27 = vld [vmem:[#allocation8 + $0xe0] sm:$0xff]  }
 0x166   :  { %1253 = vmatprep.subr.bf16.mxu0 %v2209_v29  ;;  %1294 = vmatprep.subr.bf16.mxu1 %v2212_v30  ;;  %v2287_v28 = vld [vmem:[#allocation8 + $0x20] sm:$0xff]   ;;  %v2289_v30 = vld [vmem:[#allocation8 + $0x58] sm:$0xff]  }
 0x167   :  { %v2288_v29 = vld [vmem:[#allocation8 + $0xa0] sm:$0xff]  }
 0x169   :  { %1254 = vmatpush1.bf16.msra.mxu0 %v2207_v32  ;;  %1295 = vmatpush1.bf16.msra.mxu1 %v2210_v33  ;;  %v2290_v32 = vld [vmem:[#allocation8 + $0xd8] sm:$0xff]  }
 0x16a   :  { %1255 = vmatprep.subr.bf16.mxu0 %v2215_v34  ;;  %1296 = vmatprep.subr.bf16.mxu1 %v2218_v35  ;;  %v2291_v33 = vld [vmem:[#allocation8 + $0x18] sm:$0xff]   ;;  %v2293_v35 = vld [vmem:[#allocation8 + $0x50] sm:$0xff]  }
 0x16b   :  { %v2292_v34 = vld [vmem:[#allocation8 + $0x98] sm:$0xff]  }
 0x16d   :  { %1256 = vmatpush1.bf16.msra.mxu0 %v2213_v36  ;;  %1297 = vmatpush1.bf16.msra.mxu1 %v2216_v37  ;;  %v2294_v36 = vld [vmem:[#allocation8 + $0xd0] sm:$0xff]  }
 0x16e   :  { %1257 = vmatprep.subr.bf16.mxu0 %v2221_v38  ;;  %1298 = vmatprep.subr.bf16.mxu1 %v2224_v39  ;;  %v2295_v37 = vld [vmem:[#allocation8 + $0x10] sm:$0xff]  }
 0x16f   :  { %v2296_v38 = vld [vmem:[#allocation8 + $0x90] sm:$0xff]  }
 0x171   :  { %1258 = vmatpush1.bf16.msra.mxu0 %v2219_v41  ;;  %1299 = vmatpush1.bf16.msra.mxu1 %v2222_v42 }
 0x172   :  { %1259 = vmatprep.subr.bf16.mxu0 %v2227_v48  ;;  %1300 = vmatprep.subr.bf16.mxu1 %v2230_v49  ;;  %v2297_v48 = vld [vmem:[#allocation8 + $0x48] sm:$0xff]  }
 0x173   :  { %v2298_v49 = vld [vmem:[#allocation8 + $0xc8] sm:$0xff]  }
 0x175   :  { %1260 = vmatpush2.bf16.msra.mxu0 %v2225_v50  ;;  %1301 = vmatpush2.bf16.msra.mxu1 %v2228_v51  ;;  %v2299_v50 = vld [vmem:[#allocation8 + $0x8] sm:$0xff]  }
 0x176   :  { %1261 = vmatprep.subr.bf16.mxu0 %v2233_v54  ;;  %1302 = vmatprep.subr.bf16.mxu1 %v2236_v55  ;;  %v2300_v55 = vld [vmem:[#allocation8 + $0x88] sm:$0xff]  }
 0x179   :  { %1262 = vmatpush2.bf16.msra.mxu0 %v2231_v56  ;;  %1303 = vmatpush2.bf16.msra.mxu1 %v2234_v57  ;;  %v2301_v56 = vld [vmem:[#allocation8 + $0x40] sm:$0xff]  }
 0x17a   :  { %1263 = vmatprep.subr.bf16.mxu0 %v2239_v58  ;;  %1304 = vmatprep.subr.bf16.mxu1 %v2242_v59  ;;  %v2302_v57 = vld [vmem:[#allocation8 + $0xc0] sm:$0xff]  }
 0x17d   :  { %1264 = vmatpush2.bf16.msra.mxu0 %v2237_v60  ;;  %1305 = vmatpush2.bf16.msra.mxu1 %v2240_v61 }
 0x17e   :  { %1265 = vmatprep.subr.bf16.mxu0 %v2245_v62  ;;  %1306 = vmatprep.subr.bf16.mxu1 %v2248_v63 }
 0x181   :  { %1266 = vmatpush2.bf16.msra.mxu0 %v2243_v0  ;;  %1307 = vmatpush2.bf16.msra.mxu1 %v2246_v1  ;;  %v2303_v0 = vld [vmem:[#allocation8] sm:$0xff]  }
 0x182   :  { %1267 = vmatprep.subr.bf16.mxu0 %v2251_v2  ;;  %1308 = vmatprep.subr.bf16.mxu1 %v2254_v3  ;;  %v2304_v1 = vld [vmem:[#allocation8 + $0x80] sm:$0xff]  }
 0x185   :  { %1268 = vmatpush2.bf16.msra.mxu0 %v2249_v4  ;;  %1309 = vmatpush2.bf16.msra.mxu1 %v2252_v5 }
 0x186   :  { %1269 = vmatprep.subr.bf16.mxu0 %v2257_v6  ;;  %1310 = vmatprep.subr.bf16.mxu1 %v2260_v7 }
 0x189   :  { %1270 = vmatpush2.bf16.msra.mxu0 %v2255_v8  ;;  %1311 = vmatpush2.bf16.msra.mxu1 %v2258_v9 }
 0x18a   :  { %1271 = vmatprep.subr.bf16.mxu0 %v2263_v10  ;;  %1312 = vmatprep.subr.bf16.mxu1 %v2266_v11 }
 0x18d   :  { %1272 = vmatpush2.bf16.msra.mxu0 %v2261_v53  ;;  %1313 = vmatpush2.bf16.msra.mxu1 %v2264_v12 }
 0x18e   :  { %1273 = vmatprep.subr.bf16.mxu0 %v2269_v52  ;;  %1314 = vmatprep.subr.bf16.mxu1 %v2272_v47 }
 0x191   :  { %1274 = vmatpush2.bf16.msra.mxu0 %v2267_v14  ;;  %1315 = vmatpush2.bf16.msra.mxu1 %v2270_v15 }
 0x192   :  { %2013 = vmatprep.subr.bf16.mxu0 %v2273_v16  ;;  %2035 = vmatprep.subr.bf16.mxu1 %v2274_v17 }
 0x194   :  { %1276 = vmatmul.mubr.bf16.vlgmr.msra.gmra.mxu0 %v2553_v13  ;;  %1317 = vmatmul.mubr.bf16.vlgmr.msra.gmra.mxu1 %v2555_v46  ;;  %v2282_v13 = vld [vmem:[#allocation8 + $0xe8] sm:$0xff]  }
 0x195   :  { %2014 = vmatpush3.bf16.msra.mxu0 %v2275_v18  ;;  %2036 = vmatpush3.bf16.msra.mxu1 %v2276_v19  ;;  %v2284_v46 = vld [vmem:[#allocation8 + $0xa8] sm:$0xff]  }
 0x196   :  { %2015 = vmatprep.subr.bf16.mxu0 %v2277_v20  ;;  %2037 = vmatprep.subr.bf16.mxu1 %v2278_v21 }
 0x199   :  { %2016 = vmatpush3.bf16.msra.mxu0 %v2279_v22  ;;  %2038 = vmatpush3.bf16.msra.mxu1 %v2280_v23 }
 0x19a   :  { %2017 = vmatprep.subr.bf16.mxu0 %v2281_v24  ;;  %2039 = vmatprep.subr.bf16.mxu1 %v2282_v13 }
 0x19d   :  { %2018 = vmatpush3.bf16.msra.mxu0 %v2283_v25  ;;  %2040 = vmatpush3.bf16.msra.mxu1 %v2284_v46 }
 0x19e   :  { %2019 = vmatprep.subr.bf16.mxu0 %v2285_v26  ;;  %2041 = vmatprep.subr.bf16.mxu1 %v2286_v27 }
 0x1a1   :  { %2020 = vmatpush3.bf16.msra.mxu0 %v2287_v28  ;;  %2042 = vmatpush3.bf16.msra.mxu1 %v2288_v29 }
 0x1a2   :  { %2021 = vmatprep.subr.bf16.mxu0 %v2289_v30  ;;  %2043 = vmatprep.subr.bf16.mxu1 %v2290_v32 }
 0x1a5   :  { %2022 = vmatpush3.bf16.msra.mxu0 %v2291_v33  ;;  %2044 = vmatpush3.bf16.msra.mxu1 %v2292_v34 }
 0x1a6   :  { %2023 = vmatprep.subr.bf16.mxu0 %v2293_v35  ;;  %2045 = vmatprep.subr.bf16.mxu1 %v2294_v36 }
 0x1a9   :  { %2024 = vmatpush3.bf16.msra.mxu0 %v2295_v37  ;;  %2046 = vmatpush3.bf16.msra.mxu1 %v2296_v38 }
 0x1aa   :  { %2025 = vmatprep.subr.bf16.mxu0 %v2297_v48  ;;  %2047 = vmatprep.subr.bf16.mxu1 %v2298_v49 }
 0x1ad   :  { %2026 = vmatpush3.bf16.msra.mxu0 %v2299_v50  ;;  %2048 = vmatpush3.bf16.msra.mxu1 %v2300_v55 }
 0x1ae   :  { %2027 = vmatprep.subr.bf16.mxu0 %v2301_v56  ;;  %2049 = vmatprep.subr.bf16.mxu1 %v2302_v57 }
 0x1b1   :  { %2028 = vmatpush3.bf16.msra.mxu0 %v2303_v0  ;;  %2050 = vmatpush3.bf16.msra.mxu1 %v2304_v1 }
 0x214   :  { %v1195_v39 = vpop.f32.mrf.mxu0  ;;  %v1236_v41 = vpop.f32.mrf.mxu1 }
 0x215   :  { %v1237_v42 = vadd.f32 %v1236_v41, %v1195_v39 }
 0x216   :  { %v1197_v51 = vpop.f32.mrf.mxu0  ;;  %v1238_v54 = vpop.f32.mrf.mxu1 }
 0x217   :  { %v1325_v58 = vrot.slane %v1237_v42, 4  ;;  %v1239_v59 = vadd.f32 %v1238_v54, %v1197_v51 }
 0x218   :  { %v1199_v60 = vpop.f32.mrf.mxu0  ;;  %v1240_v61 = vpop.f32.mrf.mxu1 }
 0x219   :  { %v1326_v62 = vadd.f32 %v1325_v58, %v1237_v42  ;;  %v1331_v63 = vrot.slane %v1239_v59, 4 }
 0x21a   :  { %v1200_v2 = vpop.f32.mrf.mxu0  ;;  %v1241_v3 = vpop.f32.mrf.mxu1 }
 0x21b   :  { %v1327_v4 = vrot.slane %v1326_v62, 2  ;;  %v1332_v5 = vadd.f32 %v1331_v63, %v1239_v59 }
 0x21d   :  { %v1328_v6 = vadd.f32 %v1327_v4, %v1326_v62  ;;  %v1333_v7 = vrot.slane %v1332_v5, 2 }
 0x21f   :  { %v1329_v8 = vrot.slane %v1328_v6, 1  ;;  %v1334_v9 = vadd.f32 %v1333_v7, %v1332_v5 }
 0x221   :  { %v1330_v10 = vadd.f32 %v1329_v8, %v1328_v6  ;;  %v1335_v11 = vrot.slane %v1334_v9, 1 }
 0x223   :  { %v1349_v53 = vmul.f32 0.125, %v1330_v10  ;;  %v1336_v12 = vadd.f32 %v1335_v11, %v1334_v9 }
 0x225   :  { %v2561_v52 = vsub.f32 %v1237_v42, %v1349_v53  ;;  %v1350_v47 = vmul.f32 0.125, %v1336_v12 }
 0x227   :  { %v1357_v14 = vmul.f32 %v2561_v52, %v2561_v52  ;;  %v2565_v15 = vsub.f32 %v1239_v59, %v1350_v47 }
 0x229   :  { %v1361_v16 = vrot.slane %v1357_v14, 4  ;;  %v1358_v17 = vmul.f32 %v2565_v15, %v2565_v15 }
 0x22b   :  { %v1362_v18 = vadd.f32 %v1361_v16, %v1357_v14  ;;  %v1367_v19 = vrot.slane %v1358_v17, 4 }
 0x22d   :  { %v1363_v20 = vrot.slane %v1362_v18, 2  ;;  %v1368_v21 = vadd.f32 %v1367_v19, %v1358_v17 }
 0x22f   :  { %v1364_v22 = vadd.f32 %v1363_v20, %v1362_v18  ;;  %v1369_v23 = vrot.slane %v1368_v21, 2 }
 0x231   :  { %v1365_v24 = vrot.slane %v1364_v22, 1  ;;  %v1370_v13 = vadd.f32 %v1369_v23, %v1368_v21 }
 0x233   :  { %v1366_v25 = vadd.f32 %v1365_v24, %v1364_v22  ;;  %v1371_v46 = vrot.slane %v1370_v13, 1 }
 0x235   :  { %v1385_v26 = vmul.f32 0.125, %v1366_v25  ;;  %v1372_v27 = vadd.f32 %v1371_v46, %v1370_v13 }
 0x237   :  { %v1389_v28 = vadd.f32 1e-05, %v1385_v26  ;;  %v1386_v29 = vmul.f32 0.125, %v1372_v27  ;;  %v90_v27 = vld [vmem:[#allocation10 + $0x2] ss:$8 sm:$0xf] }
 0x239   :  { %v1390_v30 = vadd.f32 1e-05, %v1386_v29  ;;  %2313 = vrsqrt.f32 %v1389_v28  ;;  %v92_v29 = vld [vmem:[#allocation10 + $0x3] ss:$8 sm:$0xf] }
 0x23b   :  { %2315 = vrsqrt.f32 %v1390_v30 }
 0x246   :  { %v2314_v32 = vpop.eup %2313 }
 0x248   :  { %v2316_v33 = vpop.eup %2315 }
 0x249   :  { %v1401_v34 = vcombine.low %v2314_v32, %v2316_v33  ;;  %v1460_v32 = vrot.slane %v92_v29, %v2535_v43  ;;  %v1468_v33 = vrot.slane %v92_v29, %v2532_v40 }
 0x24b   :  { %v1409_v25 = vrot.slane %v1401_v34, %v2528_v31 }
 0x254   :  { %v1277_v35 = vpop.f32.mrf.mxu0  ;;  %v1318_v36 = vpop.f32.mrf.mxu1 }
 0x255   :  { %v1319_v37 = vadd.f32 %v1318_v36, %v1277_v35  ;;  %v1456_v35 = vrot.slane %v92_v29, %v2537_v44  ;;  %v1464_v36 = vrot.slane %v92_v29, %v2539_v45 }
 0x256   :  { %v1279_v38 = vpop.f32.mrf.mxu0  ;;  %v1320_v39 = vpop.f32.mrf.mxu1 }
 0x257   :  { %v1337_v41 = vrot.slane %v1319_v37, 4  ;;  %v1321_v42 = vadd.f32 %v1320_v39, %v1279_v38 }
 0x258   :  { %v1281_v48 = vpop.f32.mrf.mxu0  ;;  %v1322_v49 = vpop.f32.mrf.mxu1 }
 0x259   :  { %v1338_v50 = vadd.f32 %v1337_v41, %v1319_v37  ;;  %v1343_v51 = vrot.slane %v1321_v42, 4 }
 0x25a   :  { %v1282_v54 = vpop.f32.mrf.mxu0  ;;  %v1323_v55 = vpop.f32.mrf.mxu1 }
 0x25b   :  { %v1339_v56 = vrot.slane %v1338_v50, 2  ;;  %v1344_v57 = vadd.f32 %v1343_v51, %v1321_v42 }
 0x25d   :  { %v1340_v58 = vadd.f32 %v1339_v56, %v1338_v50  ;;  %v1345_v59 = vrot.slane %v1344_v57, 2 }
 0x25f   :  { %v1341_v60 = vrot.slane %v1340_v58, 1  ;;  %v1346_v61 = vadd.f32 %v1345_v59, %v1344_v57 }
 0x261   :  { %v1342_v62 = vadd.f32 %v1341_v60, %v1340_v58  ;;  %v1347_v63 = vrot.slane %v1346_v61, 1 }
 0x263   :  { %v1351_v0 = vmul.f32 0.125, %v1342_v62  ;;  %v1348_v1 = vadd.f32 %v1347_v63, %v1346_v61  ;;  %v93_v63 = vld [vmem:[#allocation10 + $0x4] ss:$0 sm:$0xff] }
 0x265   :  { %v1355_v2 = vsub.f32 %v1319_v37, %v1351_v0  ;;  %v1352_v3 = vmul.f32 0.125, %v1348_v1 }
 0x267   :  { %v1359_v4 = vmul.f32 %v1355_v2, %v1355_v2  ;;  %v1356_v5 = vsub.f32 %v1321_v42, %v1352_v3 }
 0x269   :  { %v1373_v6 = vrot.slane %v1359_v4, 4  ;;  %v1360_v7 = vmul.f32 %v1356_v5, %v1356_v5 }
 0x26b   :  { %v1374_v8 = vadd.f32 %v1373_v6, %v1359_v4  ;;  %v1379_v9 = vrot.slane %v1360_v7, 4 }
 0x26d   :  { %v1375_v10 = vrot.slane %v1374_v8, 2  ;;  %v1380_v11 = vadd.f32 %v1379_v9, %v1360_v7 }
 0x26f   :  { %v1376_v53 = vadd.f32 %v1375_v10, %v1374_v8  ;;  %v1381_v12 = vrot.slane %v1380_v11, 2 }
 0x271   :  { %v1377_v47 = vrot.slane %v1376_v53, 1  ;;  %v1382_v14 = vadd.f32 %v1381_v12, %v1380_v11 }
 0x273   :  { %v1378_v16 = vadd.f32 %v1377_v47, %v1376_v53  ;;  %v1383_v17 = vrot.slane %v1382_v14, 1 }
 0x275   :  { %v1387_v18 = vmul.f32 0.125, %v1378_v16  ;;  %v1384_v19 = vadd.f32 %v1383_v17, %v1382_v14 }
 0x277   :  { %v1391_v20 = vadd.f32 1e-05, %v1387_v18  ;;  %v1388_v21 = vmul.f32 0.125, %v1384_v19 }
 0x279   :  { %v1392_v22 = vadd.f32 1e-05, %v1388_v21  ;;  %2317 = vrsqrt.f32 %v1391_v20 }
 0x27b   :  { %2319 = vrsqrt.f32 %v1392_v22 }
 0x286   :  { %v2318_v23 = vpop.eup %2317 }
 0x288   :  { %v2320_v24 = vpop.eup %2319 }
 0x289   :  { %v1402_v13 = vcombine.low %v2318_v23, %v2320_v24 }
 0x28b   :  { %v1416_v46 = vrot.slane %v1402_v13, %v2528_v31 }
 0x28d   :  { %v1417_v26 = vcombine.low %v1409_v25, %v1416_v46 }
 0x28f   :  { %v1424_v28 = vrot.slane %v1417_v26, %v2528_v31 }
 0x291   :  { %v1426_v30 = vmul.f32 %v1424_v28, %v90_v27 }
 0x293   :  { %v1443_v37 = vrot.slane %v1426_v30, %v2532_v40  ;;  %v1435_v34 = vrot.slane %v1426_v30, %v2535_v43  ;;  %v1431_v38 = vrot.slane %v1426_v30, %v2537_v44  ;;  %v1439_v39 = vrot.slane %v1426_v30, %v2539_v45 }
 0x295   :  { %v1451_v41 = vmul.f32 %v1443_v37, %v1356_v5  ;;  %v1449_v31 = vmul.f32 %v1435_v34, %v2565_v15  ;;  %v1448_v42 = vmul.f32 %v1431_v38, %v2561_v52  ;;  %v1450_v48 = vmul.f32 %v1439_v39, %v1355_v2 }
 0x297   :  { %v1474_v49 = vadd.f32 %v1460_v32, %v1449_v31  ;;  %v1476_v50 = vadd.f32 %v1468_v33, %v1451_v41  ;;  %v1473_v51 = vadd.f32 %v1456_v35, %v1448_v42  ;;  %v1475_v54 = vadd.f32 %v1464_v36, %v1450_v48 }
 0x299   :  { %v1478_v55 = vmul.f32 0.01, %v1474_v49  ;;  %v1480_v56 = vmul.f32 0.01, %v1476_v50  ;;  %v1477_v57 = vmul.f32 0.01, %v1473_v51 }
 0x29a   :  { %v1479_v40 = vmul.f32 0.01, %v1475_v54 }
 0x29b   :  { %v1482_v58 = vmax.f32 %v1474_v49, %v1478_v55  ;;  %v1484_v43 = vmax.f32 %v1476_v50, %v1480_v56  ;;  %v1481_v59 = vmax.f32 %v1473_v51, %v1477_v57 }
 0x29c   :  { %v1483_v44 = vmax.f32 %v1475_v54, %v1479_v40 }
 0x29d   :  { %v1486_v60 = vpack.c.bf16 %v1482_v58, %v1482_v58  ;;  %v1488_v45 = vpack.c.bf16 %v1484_v43, %v1484_v43  ;;  %v1485_v61 = vpack.c.bf16 %v1481_v59, %v1481_v59 }
 0x29e   :  { %v1487_v62 = vpack.c.bf16 %v1483_v44, %v1483_v44 }
 0x29f   :  { %1777 = vmatprep.mubr.bf16.mxu0 %v1486_v60  ;;  %1817 = vmatprep.mubr.bf16.mxu1 %v1488_v45 }
 0x2a0   :  { %1778 = vmatmul.mubr.bf16.vlgmr.msra.gmra.mxu0 %v1485_v61  ;;  %1818 = vmatmul.mubr.bf16.vlgmr.msra.gmra.mxu1 %v1487_v62 }
 0x360   :  { %v2029_v52 = vpop.f32.mrf.mxu0  ;;  %v2051_v15 = vpop.f32.mrf.mxu1 }
 0x362   :  { %v2030_v0 = vpop.f32.mrf.mxu0  ;;  %v2052_v1 = vpop.f32.mrf.mxu1 }
 0x363   :  { %v2031_v2 = vadd.f32 %v2030_v0, %v2029_v52  ;;  %v2053_v6 = vadd.f32 %v2052_v1, %v2051_v15 }
 0x364   :  { %v2032_v3 = vpop.f32.mrf.mxu0  ;;  %v2054_v4 = vpop.f32.mrf.mxu1 }
 0x365   :  { %v1780_v5 = vadd.f32 %v2031_v2, %v93_v63 }
 0x366   :  { %v2033_v7 = vpop.f32.mrf.mxu0  ;;  %v2055_v8 = vpop.f32.mrf.mxu1 }
 0x367   :  { %v1820_v9 = vadd.f32 %v2053_v6, %v1780_v5 }
 0x369   :  { %1825 = vst [vmem:[#allocation11] sm:$0xff] %v1820_v9 }
 0x36a   :  { %2432 = shalt.err (!%p2429_p1)
}
 0x36b   :  { %1835 = dma.vmem_to_hbm [thread:$0]  %s1833_s4, 128, %s2590_s5, [#allocation4]  }
 0x36c   :  { %2447 = dma.done.wait [#allocation4], 128  }
 0x36d   :  { %2448 = vsyncadd [#allocation4], 4294967168 }
 0x36e   :  { %1839 = vsyncpa [#allocation3], 1 }
 0x36f   :  { %1840 = vsyncpa [#allocation6], 1 }
 0x370   :  { %1841 = vsyncpa [#allocation9], 1 }
 0x371   :  { %1842 = vsyncpa [#allocation4], 1 }

</bundles_post_ra>
